<compile_context>
chip_gen: v7x
topology: tpu7x:2x2x1
jax: 0.10.0
libtpu: 0.0.40
codegen_flags: <defaults>
</compile_context>

<pallas_src>
from functools import lru_cache

import numpy as np
import jax
import jax.numpy as jnp
from jax.experimental import pallas as pl
from jax.experimental.pallas import tpu as pltpu

KSZ = 17   # Gaussian kernel size
PAD = 8    # Conv2d padding


def _cdiv(a, b):
    return -(-a // b)


def _round_up(a, b):
    return _cdiv(a, b) * b


# ---------------------------------------------------------------------------
# Deterministic parameter setup (no checkpoint / scipy needed).
# scipy.ndimage.gaussian_filter(dirac_17x17_center, sigma) with truncate=4.0
# -> radius = int(4*sigma + 0.5) = 8; for a centered dirac on a 17x17 grid the
# reflect boundary never contributes, so the frozen conv weight is exactly the
# outer product of the normalized 1-D Gaussian taps.
# ---------------------------------------------------------------------------
def _gaussian_taps(sigma=2.0, radius=PAD):
    t = np.arange(-radius, radius + 1, dtype=np.float64)
    g = np.exp(-0.5 * t * t / (sigma * sigma))
    return g / g.sum()                                   # (17,)


def make_gaussian_weight(sigma=2.0, radius=PAD):
    g = _gaussian_taps(sigma, radius)
    return np.outer(g, g).astype(np.float32)             # (17,17) -- reference only


@lru_cache(maxsize=None)
def make_fused_operator(sz=32, factor=8, sigma=2.0):
    """MT = kron(A, A)^T of shape (sz*sz, size*size) float32, A = P_pool @ C_gauss
    (folds zero-padded 17-tap Gaussian conv + AvgPool). Memoized on the host."""
    g = _gaussian_taps(sigma, PAD)                       # float64
    # C_gauss[i, r] = g[r - i + PAD] for |r - i| <= PAD (zero padding -> drop OOB)
    C = np.zeros((sz, sz), dtype=np.float64)
    for i in range(sz):
        for u in range(KSZ):
            r = i + u - PAD
            if 0 <= r < sz:
                C[i, r] += g[u]
    size = sz // factor
    P = np.zeros((size, sz), dtype=np.float64)
    for p in range(size):
        P[p, p * factor:(p + 1) * factor] = 1.0 / factor
    A = P @ C                                            # (size, sz)
    M = np.kron(A, A)                                    # (size*size, sz*sz)
    return np.ascontiguousarray(M.T).astype(np.float32)  # (sz*sz, size*size)


# Device-side cache of the bf16 hi/lo split of MT (hi + lo ~ f32-exact).
_MT_DEVICE_CACHE = {}


def _fused_operator_hi_lo(sz, factor, sigma):
    key = (int(sz), int(factor), float(sigma))
    hit = _MT_DEVICE_CACHE.get(key)
    if hit is None:
        m = jnp.asarray(make_fused_operator(int(sz), int(factor), float(sigma)))
        m_hi = m.astype(jnp.bfloat16)
        m_lo = (m - m_hi.astype(jnp.float32)).astype(jnp.bfloat16)
        hit = (m_hi, m_lo)
        _MT_DEVICE_CACHE[key] = hit
    return hit


# ---------------------------------------------------------------------------
# Generation-aware hardware queries (defensive: fall back to safe defaults).
# ---------------------------------------------------------------------------
def _vmem_capacity_bytes():
    try:
        cap = getattr(pltpu.get_tpu_info(), "vmem_capacity_bytes", None)
        if cap:
            return int(cap)
    except Exception:
        pass
    return 64 << 20   # conservative (v7x-sized) fallback


def _num_tensorcores():
    try:
        info = pltpu.get_tpu_info()
        for name in ("num_cores", "num_tensorcores", "cores_per_chip", "core_count"):
            v = getattr(info, name, None)
            if v:
                return max(1, int(v))
    except Exception:
        pass
    try:
        return max(1, int(getattr(jax.devices()[0], "num_cores", 1) or 1))
    except Exception:
        return 1


# ---------------------------------------------------------------------------
# Kernels.
#   x_ref : (TB, sz*sz)        flattened images (f32 or bf16)
#   m*_ref: (sz*sz, size^2)    fused conv+pool operator, bf16 hi/lo parts
#   o_ref : (TB, size^2)       f32
# ---------------------------------------------------------------------------
def _downsampler_kernel_bf16x3(x_ref, mhi_ref, mlo_ref, o_ref):
    # Explicit, deterministic "bf16x3" product: splits the f32 images into
    # bf16 hi+lo parts and does 3 native bf16 MXU passes with f32 accumulation
    # (drops only the x_lo*m_lo term, ~1e-5 abs error). Pins the MXU pass
    # count so numerics don't vary across generations / compiler defaults.
    x = x_ref[...]
    x_hi = x.astype(jnp.bfloat16)
    x_lo = (x - x_hi.astype(jnp.float32)).astype(jnp.bfloat16)
    m_hi = mhi_ref[...]
    m_lo = mlo_ref[...]
    acc = jnp.dot(x_hi, m_hi, preferred_element_type=jnp.float32)
    acc = acc + jnp.dot(x_lo, m_hi, preferred_element_type=jnp.float32)
    acc = acc + jnp.dot(x_hi, m_lo, preferred_element_type=jnp.float32)
    o_ref[...] = acc


def _downsampler_kernel_bf16(x_ref, mhi_ref, o_ref):
    # Fast path: bf16 images streamed from HBM (half the bytes), single MXU
    # pass, f32 accumulation.  ~bf16 accuracy (abs err up to ~1e-2).
    o_ref[...] = jnp.dot(x_ref[...].astype(jnp.bfloat16), mhi_ref[...],
                         preferred_element_type=jnp.float32)


# ---------------------------------------------------------------------------
# Wrapper.
# ---------------------------------------------------------------------------
def downsampler_forward(x, *, k=1, factor=8, sz=32, sigma=2.0, nc=1,
                        block_images=4096, precision="bf16x3"):
    """Equivalent of Downsampler.forward.

    x: any shape reshapeable to (-1, k, nc, sz, sz).
    precision: "bf16x3" (default, ~f32 accuracy, 3 MXU passes) or
               "bf16"   (opt-in fast path: bf16 images, single MXU pass).
    Returns (B, k, nc * (sz//factor)**2) float32.
    """
    assert precision in ("bf16x3", "bf16")
    fast = precision == "bf16"
    size = sz // factor
    in_dim, out_dim = sz * sz, size * size

    in_dtype = jnp.bfloat16 if fast else jnp.float32
    x_flat = jnp.asarray(x)
    if x_flat.dtype != in_dtype:
        # No-op for f32 callers on the default path. For the fast path this
        # cast costs one extra pass unless the caller already holds bf16.
        x_flat = x_flat.astype(in_dtype)
    x_flat = x_flat.reshape(-1, in_dim)                  # (N, sz*sz)
    n = x_flat.shape[0]
    b = n // (k * nc)
    x_bytes = 2 if fast else 4

    m_hi, m_lo = _fused_operator_hi_lo(sz, factor, sigma)

    # ---- generation-aware block sizing (per perf review) -------------------
    # Per-image VMEM: double-buffered input block + in-kernel hi/lo bf16
    # intermediates (+ one f32 temp) + double-buffered, lane-padded output.
    vmem_cap = _vmem_capacity_bytes()                      # 64 MiB v7x, 128 MiB v5e/v6e
    vmem_budget = max(32 << 20, min(int(vmem_cap * 0.70), 100 << 20))
    per_img = 2 * in_dim * x_bytes + 2 * 128 * 4
    if not fast:
        per_img += in_dim * (2 + 2 + 4)                    # x_hi, x_lo, f32 temp
    fixed = 4 << 20                                        # MT buffers + compiler scratch
    gran = 16 if fast else 8                               # sublane granularity (bf16/f32)
    fit = max(gran, ((vmem_budget - fixed) // per_img) // gran * gran)

    tb = min(block_images, fit, _round_up(n, gran))
    cores = _num_tensorcores()
    if cores > 1:
        # Only force >=`cores` grid steps on multi-TensorCore parts (v7x);
        # on 1-TC v5e/v6e keep one long DMA burst per block.
        tb = min(tb, _round_up(_cdiv(n, cores), gran))
    tb = max(gran, (tb // gran) * gran)
    grid = (_cdiv(n, tb),)
    # NOTE: tb need not divide n.  The last block's output rows past n are
    # masked by the Pallas writeback; garbage input rows only feed those
    # masked rows.  Keep out_specs row-major over images if you edit this.

    cost = pl.CostEstimate(
        flops=(1 if fast else 3) * 2 * n * in_dim * out_dim,
        transcendentals=0,
        bytes_accessed=n * in_dim * x_bytes + n * out_dim * 4
                       + (1 if fast else 2) * in_dim * out_dim * 2,
    )

    mt_spec = pl.BlockSpec((in_dim, out_dim), lambda i: (0, 0))   # fetched once
    in_specs = [pl.BlockSpec((tb, in_dim), lambda i: (i, 0)), mt_spec]
    operands = [x_flat, m_hi]
    kernel = _downsampler_kernel_bf16
    if not fast:
        in_specs.append(mt_spec)
        operands.append(m_lo)
        kernel = _downsampler_kernel_bf16x3

    out = pl.pallas_call(
        kernel,
        out_shape=jax.ShapeDtypeStruct((n, out_dim), jnp.float32),
        grid_spec=pltpu.PrefetchScalarGridSpec(
            num_scalar_prefetch=0,
            grid=grid,
            in_specs=in_specs,
            out_specs=pl.BlockSpec((tb, out_dim), lambda i: (i, 0)),
        ),
        compiler_params=pltpu.CompilerParams(
            dimension_semantics=("parallel",),
            vmem_limit_bytes=int(vmem_budget),
        ),
        cost_estimate=cost,
    )(*operands)

    return out.reshape(b, k, nc * out_dim)


# ---------------------------------------------------------------------------
# Pure-numpy reference (same semantics as the PyTorch forward).
# ---------------------------------------------------------------------------
def reference_forward(x, k, factor, sz, sigma, nc):
    size = sz // factor
    W = make_gaussian_weight(sigma=sigma)
    xn = np.asarray(x, np.float32).reshape(-1, sz, sz)
    xp = np.pad(xn, ((0, 0), (PAD, PAD), (PAD, PAD)))
    conv = np.zeros_like(xn)
    for u in range(KSZ):
        for v in range(KSZ):
            conv += W[u, v] * xp[:, u:u + sz, v:v + sz]
    pooled = conv.reshape(-1, size, factor, size, factor).mean(axis=(2, 4))
    b = xn.shape[0] // (k * nc)
    return pooled.reshape(b, k, nc * size * size)


if __name__ == "__main__":
    SZ, FACTOR, SIGMA = 32, 8, 2.0

    # Case 1: module defaults (k=1, nc=1), small batch, default accurate path.
    B1, K1, NC1 = 2, 1, 1
    x1 = jax.random.normal(jax.random.PRNGKey(0), (B1, K1, SZ, SZ), dtype=jnp.float32)
    out1 = jax.block_until_ready(
        downsampler_forward(x1, k=K1, factor=FACTOR, sz=SZ, sigma=SIGMA, nc=NC1))
    ref1 = reference_forward(x1, K1, FACTOR, SZ, SIGMA, NC1)
    assert out1.shape == ref1.shape == (B1, K1, NC1 * (SZ // FACTOR) ** 2), \
        (out1.shape, ref1.shape)
    assert np.allclose(np.asarray(out1), ref1, rtol=1e-4, atol=2e-4), \
        float(np.max(np.abs(np.asarray(out1) - ref1)))

    # Case 2: multi-step grid with a partial last block (13 images, TB forced to 8).
    B2, K2, NC2 = 13, 1, 1
    x2 = jax.random.normal(jax.random.PRNGKey(1), (B2, K2, SZ, SZ), dtype=jnp.float32)
    out2 = jax.block_until_ready(
        downsampler_forward(x2, k=K2, factor=FACTOR, sz=SZ, sigma=SIGMA, nc=NC2,
                            block_images=8))
    ref2 = reference_forward(x2, K2, FACTOR, SZ, SIGMA, NC2)
    assert out2.shape == ref2.shape, (out2.shape, ref2.shape)
    assert np.allclose(np.asarray(out2), ref2, rtol=1e-4, atol=2e-4), \
        float(np.max(np.abs(np.asarray(out2) - ref2)))

    # Case 3: opt-in fast single-pass bf16 path (half HBM reads); bf16 tolerance.
    out3 = jax.block_until_ready(
        downsampler_forward(x1, k=K1, factor=FACTOR, sz=SZ, sigma=SIGMA, nc=NC1,
                            precision="bf16"))
    assert out3.shape == ref1.shape, (out3.shape, ref1.shape)
    assert np.allclose(np.asarray(out3), ref1, rtol=5e-2, atol=5e-2), \
        float(np.max(np.abs(np.asarray(out3) - ref1)))

    print("KERNEL_OK")
</pallas_src>

<mosaic_0001>
module attributes {stable_mosaic.version = 11 : i64} {
  func.func @_downsampler_kernel_bf16x3(%arg0: i32, %arg1: memref<8x1024xf32, #tpu.memory_space<vmem>>, %arg2: memref<1024x16xbf16, #tpu.memory_space<vmem>>, %arg3: memref<1024x16xbf16, #tpu.memory_space<vmem>>, %arg4: memref<8x16xf32, #tpu.memory_space<vmem>>) attributes {dimension_semantics = [#tpu.dimension_semantics<parallel>], iteration_bounds = array<i64: 1>, scalar_prefetch = 0 : i64, scratch_operands = 0 : i64, tpu.core_type = #tpu.core_type<tc>, window_params = [{transform_indices = @transform_0, window_bounds = array<i64: 8, 1024>}, {pipeline_mode = #tpu.pipeline_mode<synchronous>, transform_indices = @transform_1, window_bounds = array<i64: 1024, 16>}, {pipeline_mode = #tpu.pipeline_mode<synchronous>, transform_indices = @transform_2, window_bounds = array<i64: 1024, 16>}, {transform_indices = @transform_3, window_bounds = array<i64: 8, 16>}]} {
    %c0 = arith.constant 0 : index
    %c0_0 = arith.constant 0 : index
    %0 = vector.load %arg1[%c0, %c0_0] : memref<8x1024xf32, #tpu.memory_space<vmem>>, vector<8x1024xf32>
    %1 = arith.truncf %0 : vector<8x1024xf32> to vector<8x1024xbf16>
    %2 = arith.extf %1 : vector<8x1024xbf16> to vector<8x1024xf32>
    %3 = arith.subf %0, %2 : vector<8x1024xf32>
    %4 = arith.truncf %3 : vector<8x1024xf32> to vector<8x1024xbf16>
    %c0_1 = arith.constant 0 : index
    %c0_2 = arith.constant 0 : index
    %5 = vector.load %arg2[%c0_1, %c0_2] : memref<1024x16xbf16, #tpu.memory_space<vmem>>, vector<1024x16xbf16>
    %c0_3 = arith.constant 0 : index
    %c0_4 = arith.constant 0 : index
    %6 = vector.load %arg3[%c0_3, %c0_4] : memref<1024x16xbf16, #tpu.memory_space<vmem>>, vector<1024x16xbf16>
    %cst = arith.constant dense<0.000000e+00> : vector<8x16xf32>
    %7 = tpu.matmul %1, %5, %cst {dimension_numbers = #tpu.dot_dimension_numbers<[1], [0], [0], [1], [0, 0, 1, 1], [], []>} : vector<8x1024xbf16>, vector<1024x16xbf16>, vector<8x16xf32> -> vector<8x16xf32>
    %cst_5 = arith.constant dense<0.000000e+00> : vector<8x16xf32>
    %8 = tpu.matmul %4, %5, %cst_5 {dimension_numbers = #tpu.dot_dimension_numbers<[1], [0], [0], [1], [0, 0, 1, 1], [], []>} : vector<8x1024xbf16>, vector<1024x16xbf16>, vector<8x16xf32> -> vector<8x16xf32>
    %9 = arith.addf %7, %8 : vector<8x16xf32>
    %cst_6 = arith.constant dense<0.000000e+00> : vector<8x16xf32>
    %10 = tpu.matmul %1, %6, %cst_6 {dimension_numbers = #tpu.dot_dimension_numbers<[1], [0], [0], [1], [0, 0, 1, 1], [], []>} : vector<8x1024xbf16>, vector<1024x16xbf16>, vector<8x16xf32> -> vector<8x16xf32>
    %11 = arith.addf %9, %10 : vector<8x16xf32>
    %c0_7 = arith.constant 0 : index
    %c0_8 = arith.constant 0 : index
    %12 = vector.load %arg4[%c0_7, %c0_8] : memref<8x16xf32, #tpu.memory_space<vmem>>, vector<8x16xf32>
    tpu.vector_store %arg4[%c0_7, %c0_8], %11 {strides = array<i32>} : memref<8x16xf32, #tpu.memory_space<vmem>>, vector<8x16xf32>,
    return
  }
  func.func @transform_0(%arg0: i32) -> (i32, i32) {
    %c0_i32 = arith.constant 0 : i32
    %c0_i32_0 = arith.constant 0 : i32
    return %arg0, %c0_i32 : i32, i32
  }
  func.func @transform_1(%arg0: i32) -> (i32, i32) {
    %c0_i32 = arith.constant 0 : i32
    %c0_i32_0 = arith.constant 0 : i32
    %c0_i32_1 = arith.constant 0 : i32
    return %c0_i32, %c0_i32_0 : i32, i32
  }
  func.func @transform_2(%arg0: i32) -> (i32, i32) {
    %c0_i32 = arith.constant 0 : i32
    %c0_i32_0 = arith.constant 0 : i32
    %c0_i32_1 = arith.constant 0 : i32
    return %c0_i32, %c0_i32_0 : i32, i32
  }
  func.func @transform_3(%arg0: i32) -> (i32, i32) {
    %c0_i32 = arith.constant 0 : i32
    %c0_i32_0 = arith.constant 0 : i32
    return %arg0, %c0_i32 : i32, i32
  }
}

</mosaic_0001>

<bundles_post_ra>
// kernel: tpu_custom_call.1
= control target key start
LH: loop header
LB: loop body
LE: loop exit
PB: predicated region body
PF: predicated region fallthrough
CT: control target
= control target key end

     0   :  { %8 = vsyncpa [#allocation3], 0  ;;  %v39_v29 = vlaneseq  ;;  %v2399_v37 = vmov 1983009808   ;;  %vm1825_vm0 = vcmask 130048   ;;  %s3185_s0 = inlined_call_operand.vmem [shape: f32[2,1024], index: 0, kind: input, shape index: {}]   ;;  %s3186_s1 = inlined_call_operand.vmem [shape: bf16[1024,16], index: 1, kind: input, shape index: {}]   ;;  %s3187_s2 = inlined_call_operand.vmem [shape: bf16[1024,16], index: 2, kind: input, shape index: {}]   ;;  %s3188_s3 = inlined_call_operand.hbm [shape: f32[2,16], index: 3, kind: output, shape index: {}]  }
   0x1   :  { %v2426_v0 = vld [vmem:[%s3186_s1 + $0x40] sm:$0xff]   ;;  %v2449_v4 = vld [vmem:[%s3186_s1 + $0x48] sm:$0xff]   ;;  %v2473_v8 = vld [vmem:[%s3186_s1 + $0x50] sm:$0xff]   ;;  %v37_v38 = vunpack.c.l.s4 %v2399_v37 }
   0x2   :  { %v2431_v1 = vld [vmem:[%s3186_s1 + $0xc0] sm:$0xff]   ;;  %1971 = vmatprep.subr.bf16.mxu0 %v2426_v0  ;;  %v2455_v5 = vld [vmem:[%s3186_s1 + $0xc8] sm:$0xff]   ;;  %v2479_v9 = vld [vmem:[%s3186_s1 + $0xd0] sm:$0xff]   ;;  %v40_v39 = vshrl.u32 %v39_v29, 7 }
   0x3   :  { %v2437_v2 = vld [vmem:[%s3186_s1] sm:$0xff]   ;;  %1993 = vmatprep.subr.bf16.mxu1 %v2431_v1  ;;  %v2461_v6 = vld [vmem:[%s3186_s1 + $0x8] sm:$0xff]   ;;  %v2485_v10 = vld [vmem:[%s3186_s1 + $0x10] sm:$0xff]   ;;  %v38_v45 = vunpack.c.0.s8 %v37_v38 }
   0x4   :  { %v2443_v3 = vld [vmem:[%s3186_s1 + $0x80] sm:$0xff]   ;;  %1972 = vmatpush3.bf16.msra.mxu0 %v2437_v2  ;;  %v2467_v7 = vld [vmem:[%s3186_s1 + $0x88] sm:$0xff]   ;;  %v2491_v11 = vld [vmem:[%s3186_s1 + $0x90] sm:$0xff]  }
   0x5   :  { %1994 = vmatpush3.bf16.msra.mxu1 %v2443_v3  ;;  %1973 = vmatprep.subr.bf16.mxu0 %v2449_v4  ;;  %v2497_v12 = vld [vmem:[%s3186_s1 + $0x58] sm:$0xff]   ;;  %v2521_v16 = vld [vmem:[%s3186_s1 + $0x60] sm:$0xff]   ;;  %v2545_v20 = vld [vmem:[%s3186_s1 + $0x68] sm:$0xff]   ;;  %v2638_v47 = vsub.s32 %v38_v45, %v40_v39 }
   0x6   :  { %1995 = vmatprep.subr.bf16.mxu1 %v2455_v5  ;;  %v2503_v13 = vld [vmem:[%s3186_s1 + $0xd8] sm:$0xff]   ;;  %v2527_v17 = vld [vmem:[%s3186_s1 + $0xe0] sm:$0xff]   ;;  %v2551_v21 = vld [vmem:[%s3186_s1 + $0xe8] sm:$0xff]  }
   0x7   :  { %v2509_v14 = vld [vmem:[%s3186_s1 + $0x18] sm:$0xff]   ;;  %v2533_v18 = vld [vmem:[%s3186_s1 + $0x20] sm:$0xff]   ;;  %v2557_v22 = vld [vmem:[%s3186_s1 + $0x28] sm:$0xff]  }
   0x8   :  { %1974 = vmatpush3.bf16.msra.mxu0 %v2461_v6  ;;  %v2515_v15 = vld [vmem:[%s3186_s1 + $0x98] sm:$0xff]   ;;  %v2539_v19 = vld [vmem:[%s3186_s1 + $0xa0] sm:$0xff]   ;;  %v2563_v23 = vld [vmem:[%s3186_s1 + $0xa8] sm:$0xff]  }
   0x9   :  { %1996 = vmatpush3.bf16.msra.mxu1 %v2467_v7  ;;  %1975 = vmatprep.subr.bf16.mxu0 %v2473_v8  ;;  %v2569_v24 = vld [vmem:[%s3186_s1 + $0x70] sm:$0xff]   ;;  %v2593_v28 = vld [vmem:[%s3186_s1 + $0x78] sm:$0xff]   ;;  %v16_v33 = vld [vmem:[%s3185_s0] sm:$0xff] }
   0xa   :  { %1997 = vmatprep.subr.bf16.mxu1 %v2479_v9  ;;  %v2575_v25 = vld [vmem:[%s3186_s1 + $0xf0] sm:$0xff]   ;;  %v2599_v30 = vld [vmem:[%s3186_s1 + $0xf8] sm:$0xff]   ;;  %v20_v35 = vld [vmem:[%s3185_s0 + $0x20] sm:$0xff] }
   0xb   :  { %v2581_v26 = vld [vmem:[%s3186_s1 + $0x30] sm:$0xff]   ;;  %v2605_v31 = vld [vmem:[%s3186_s1 + $0x38] sm:$0xff]   ;;  %v2630_v41 = vld [vmem:[%s3186_s1 + $0x140] sm:$0xff]  }
   0xc   :  { %1976 = vmatpush3.bf16.msra.mxu0 %v2485_v10  ;;  %v2587_v27 = vld [vmem:[%s3186_s1 + $0xb0] sm:$0xff]   ;;  %v2611_v32 = vld [vmem:[%s3186_s1 + $0xb8] sm:$0xff]   ;;  %v2635_v46 = vld [vmem:[%s3186_s1 + $0x1c0] sm:$0xff]  }
   0xd   :  { %1998 = vmatpush3.bf16.msra.mxu1 %v2491_v11  ;;  %1977 = vmatprep.subr.bf16.mxu0 %v2497_v12  ;;  %v18_v34 = vld [vmem:[%s3185_s0 + $0x10] sm:$0xff] }
   0xe   :  { %1999 = vmatprep.subr.bf16.mxu1 %v2503_v13  ;;  %v22_v36 = vld [vmem:[%s3185_s0 + $0x30] sm:$0xff]  ;;  %v32_v40 = vcombine.low %v16_v33, %v18_v34  ;;  %v33_v42 = vcombine.high %v16_v33, %v18_v34 }
   0xf   :  { %v34_v43 = vcombine.low %v20_v35, %v22_v36  ;;  %v35_v44 = vcombine.high %v20_v35, %v22_v36 }
  0x10   :  { %1978 = vmatpush3.bf16.msra.mxu0 %v2509_v14  ;;  %v42_v48 = vrot.slane %v32_v40, %v2638_v47  ;;  %v49_v49 = vrot.slane %v33_v42, %v2638_v47 }
  0x11   :  { %2000 = vmatpush3.bf16.msra.mxu1 %v2515_v15  ;;  %1979 = vmatprep.subr.bf16.mxu0 %v2521_v16  ;;  %v56_v50 = vrot.slane %v34_v43, %v2638_v47  ;;  %v63_v51 = vrot.slane %v35_v44, %v2638_v47 }
  0x12   :  { %2001 = vmatprep.subr.bf16.mxu1 %v2527_v17 }
  0x13   :  { %v64_v52 = vcombine.low %v42_v48, %v56_v50  ;;  %v65_v53 = vcombine.high %v42_v48, %v56_v50  ;;  %v66_v54 = vcombine.low %v49_v49, %v63_v51  ;;  %v67_v55 = vcombine.high %v49_v49, %v63_v51 }
  0x14   :  { %1980 = vmatpush3.bf16.msra.mxu0 %v2533_v18 }
  0x15   :  { %2002 = vmatpush3.bf16.msra.mxu1 %v2539_v19  ;;  %1981 = vmatprep.subr.bf16.mxu0 %v2545_v20  ;;  %v2645_v56 = vpack.c.bf16 %v64_v52, %v64_v52  ;;  %v2647_v57 = vpack.c.bf16 %v65_v53, %v65_v53  ;;  %v2649_v58 = vpack.c.bf16 %v66_v54, %v66_v54 }
  0x16   :  { %2003 = vmatprep.subr.bf16.mxu1 %v2551_v21  ;;  %v2651_v59 = vpack.c.bf16 %v67_v55, %v67_v55 }
  0x17   :  { %v120_v60 = vunpack.c.l.bf16 %v2645_v56  ;;  %v121_v61 = vunpack.c.l.bf16 %v2647_v57  ;;  %v122_v62 = vunpack.c.l.bf16 %v2649_v58 }
  0x18   :  { %1982 = vmatpush3.bf16.msra.mxu0 %v2557_v22  ;;  %v123_v63 = vunpack.c.l.bf16 %v2651_v59 }
  0x19   :  { %2004 = vmatpush3.bf16.msra.mxu1 %v2563_v23  ;;  %1983 = vmatprep.subr.bf16.mxu0 %v2569_v24  ;;  %v136_v29 = vcombine.low %v120_v60, %v121_v61  ;;  %v137_v37 = vcombine.high %v120_v60, %v121_v61 }
  0x1a   :  { %2005 = vmatprep.subr.bf16.mxu1 %v2575_v25  ;;  %v138_v38 = vcombine.low %v122_v62, %v123_v63  ;;  %v139_v39 = vcombine.high %v122_v62, %v123_v63 }
  0x1b   :  { %v146_v40 = vrot.slane %v136_v29, %v2638_v47  ;;  %v153_v42 = vrot.slane %v137_v37, %v2638_v47 }
  0x1c   :  { %1984 = vmatpush3.bf16.msra.mxu0 %v2581_v26  ;;  %v160_v43 = vrot.slane %v138_v38, %v2638_v47  ;;  %v167_v44 = vrot.slane %v139_v39, %v2638_v47 }
  0x1d   :  { %2006 = vmatpush3.bf16.msra.mxu1 %v2587_v27  ;;  %1985 = vmatprep.subr.bf16.mxu0 %v2593_v28 }
  0x1e   :  { %2007 = vmatprep.subr.bf16.mxu1 %v2599_v30  ;;  %v168_v45 = vcombine.low %v146_v40, %v160_v43  ;;  %v169_v48 = vcombine.high %v146_v40, %v160_v43  ;;  %v170_v49 = vcombine.low %v153_v42, %v167_v44  ;;  %v171_v50 = vcombine.high %v153_v42, %v167_v44 }
  0x20   :  { %1986 = vmatpush3.bf16.msra.mxu0 %v2605_v31  ;;  %v216_v51 = vsub.f32 %v16_v33, %v168_v45  ;;  %v218_v52 = vsub.f32 %v18_v34, %v169_v48  ;;  %v220_v53 = vsub.f32 %v20_v35, %v170_v49  ;;  %v222_v54 = vsub.f32 %v22_v36, %v171_v50  ;;  %v2668_v33 = vld [vmem:[%s3186_s1 + $0x100] sm:$0xff]   ;;  %v2678_v48 = vld [vmem:[%s3186_s1 + $0x148] sm:$0xff]  }
  0x21   :  { %2008 = vmatpush3.bf16.msra.mxu1 %v2611_v32  ;;  %2015 = vmatprep.subr.bf16.mxu0 %v2630_v41  ;;  %v2673_v34 = vld [vmem:[%s3186_s1 + $0x180] sm:$0xff]   ;;  %v2683_v49 = vld [vmem:[%s3186_s1 + $0x1c8] sm:$0xff]  }
  0x22   :  { %2037 = vmatprep.subr.bf16.mxu1 %v2635_v46  ;;  %v232_v55 = vcombine.low %v216_v51, %v218_v52  ;;  %v234_v60 = vcombine.low %v220_v53, %v222_v54  ;;  %v233_v61 = vcombine.high %v216_v51, %v218_v52  ;;  %v235_v62 = vcombine.high %v220_v53, %v222_v54  ;;  %v2688_v50 = vld [vmem:[%s3186_s1 + $0x108] sm:$0xff]   ;;  %v2698_v52 = vld [vmem:[%s3186_s1 + $0x150] sm:$0xff]  }
  0x23   :  { %3216 = vst [vmem:[#allocation5_spill] sm:$0xff] %v2688_v50  ;;  %v2693_v51 = vld [vmem:[%s3186_s1 + $0x188] sm:$0xff]   ;;  %3218 = vst [vmem:[#allocation7_spill] sm:$0xff] %v2698_v52  ;;  %v2705_v53 = vld [vmem:[%s3186_s1 + $0x1d0] sm:$0xff]  }
  0x24   :  { %v242_v63 = vrot.slane %v232_v55, %v2638_v47  ;;  %v256_v29 = vrot.slane %v234_v60, %v2638_v47  ;;  %v249_v37 = vrot.slane %v233_v61, %v2638_v47  ;;  %v263_v38 = vrot.slane %v235_v62, %v2638_v47  ;;  %3217 = vst [vmem:[#allocation6_spill] sm:$0xff] %v2693_v51  ;;  %v2710_v54 = vld [vmem:[%s3185_s0 + $0x8] sm:$0xff]  ;;  %v2717_v55 = vld [vmem:[%s3185_s0 + $0x18] sm:$0xff]  ;;  %v2732_v62 = vld [vmem:[%s3186_s1 + $0x110] sm:$0xff]  }
  0x25   :  { %3219 = vst [vmem:[#allocation8_spill] sm:$0xff] %v2705_v53  ;;  %v2722_v60 = vld [vmem:[%s3185_s0 + $0x28] sm:$0xff]  ;;  %v2727_v61 = vld [vmem:[%s3185_s0 + $0x38] sm:$0xff]  ;;  %3220 = vst [vmem:[#allocation9_spill] sm:$0xff] %v2732_v62 }
  0x26   :  { %v265_v39 = vcombine.high %v242_v63, %v256_v29  ;;  %v267_v40 = vcombine.high %v249_v37, %v263_v38  ;;  %v264_v43 = vcombine.low %v242_v63, %v256_v29  ;;  %v266_v42 = vcombine.low %v249_v37, %v263_v38 }
  0x27   :  { %v68_v63 = vcombine.low %v2710_v54, %v2717_v55  ;;  %v69_v29 = vcombine.high %v2710_v54, %v2717_v55  ;;  %v70_v37 = vcombine.low %v2722_v60, %v2727_v61  ;;  %v71_v38 = vcombine.high %v2722_v60, %v2727_v61 }
  0x28   :  { %v313_v35 = vpack.c.bf16 %v265_v39, %v265_v39  ;;  %v315_v36 = vpack.c.bf16 %v267_v40, %v267_v40  ;;  %v312_v44 = vpack.c.bf16 %v264_v43, %v264_v43  ;;  %v314_v45 = vpack.c.bf16 %v266_v42, %v266_v42  ;;  %v2745_v39 = vld [vmem:[%s3186_s1 + $0x190] sm:$0xff]   ;;  %v2752_v40 = vld [vmem:[%s3186_s1 + $0x158] sm:$0xff]  }
  0x29   :  { %3221 = vst [vmem:[#allocation10_spill] sm:$0xff] %v2745_v39  ;;  %3222 = vst [vmem:[#allocation11_spill] sm:$0xff] %v2752_v40  ;;  %v78_v43 = vrot.slane %v68_v63, %v2638_v47  ;;  %v85_v42 = vrot.slane %v69_v29, %v2638_v47 }
  0x2a   :  { %992 = vmatprep.mubr.bf16.mxu0 %v313_v35  ;;  %1032 = vmatprep.mubr.bf16.mxu1 %v315_v36  ;;  %v92_v35 = vrot.slane %v70_v37, %v2638_v47  ;;  %v2762_v36 = vld [vmem:[%s3186_s1 + $0x1d8] sm:$0xff]  }
  0x2b   :  { %993 = vmatmul.mubr.bf16.vlgmr.msra.gmra.mrb[0].mxu0 %v312_v44  ;;  %1033 = vmatmul.mubr.bf16.vlgmr.msra.gmra.mrb[0].mxu1 %v314_v45  ;;  %3223 = vst [vmem:[#allocation12_spill] sm:$0xff] %v2762_v36  ;;  %v99_v44 = vrot.slane %v71_v38, %v2638_v47  ;;  %v2768_v45 = vld [vmem:[%s3186_s1 + $0x118] sm:$0xff]   ;;  %v2780_v38 = vld [vmem:[%s3186_s1 + $0x160] sm:$0xff]  }
  0x2c   :  { %2016 = vmatpush3.bf16.msra.mxu0 %v2668_v33  ;;  %2038 = vmatpush3.bf16.msra.mxu1 %v2673_v34  ;;  %3224 = vst [vmem:[#allocation13_spill] sm:$0xff] %v2768_v45  ;;  %v100_v63 = vcombine.low %v78_v43, %v92_v35  ;;  %v101_v29 = vcombine.high %v78_v43, %v92_v35  ;;  %v2773_v37 = vld [vmem:[%s3186_s1 + $0x198] sm:$0xff]   ;;  %3226 = vst [vmem:[#allocation15_spill] sm:$0xff] %v2780_v38  ;;  %v2791_v43 = vld [vmem:[%s3186_s1 + $0x1e0] sm:$0xff]  }
  0x2d   :  { %2017 = vmatprep.subr.bf16.mxu0 %v2678_v48  ;;  %2039 = vmatprep.subr.bf16.mxu1 %v2683_v49  ;;  %3225 = vst [vmem:[#allocation14_spill] sm:$0xff] %v2773_v37  ;;  %3229 = vst [vmem:[#allocation18_spill] sm:$0xff] %v2791_v43 }
  0x30   :  { %2018 = vmatpush3.bf16.msra.mxu0 %v2688_v50  ;;  %2040 = vmatpush3.bf16.msra.mxu1 %v2693_v51  ;;  %v2782_v51 = vpack.c.bf16 %v100_v63, %v100_v63  ;;  %v2784_v50 = vpack.c.bf16 %v101_v29, %v101_v29 }
  0x31   :  { %2019 = vmatprep.subr.bf16.mxu0 %v2698_v52  ;;  %2041 = vmatprep.subr.bf16.mxu1 %v2705_v53  ;;  %v102_v53 = vcombine.low %v85_v42, %v99_v44  ;;  %v103_v52 = vcombine.high %v85_v42, %v99_v44  ;;  %v2800_v44 = vld [vmem:[%s3186_s1 + $0x120] sm:$0xff]  }
  0x32   :  { %3227 = vst [vmem:[#allocation16_spill] sm:$0xff] %v2782_v51  ;;  %3228 = vst [vmem:[#allocation17_spill] sm:$0xff] %v2784_v50  ;;  %v124_v63 = vunpack.c.l.bf16 %v2782_v51  ;;  %v125_v29 = vunpack.c.l.bf16 %v2784_v50 }
  0x33   :  { %v2793_v42 = vpack.c.bf16 %v102_v53, %v102_v53  ;;  %v2795_v35 = vpack.c.bf16 %v103_v52, %v103_v52  ;;  %3232 = vst [vmem:[#allocation21_spill] sm:$0xff] %v2800_v44  ;;  %v2816_v52 = vld [vmem:[%s3186_s1 + $0x168] sm:$0xff]  }
  0x34   :  { %2020 = vmatpush3.bf16.msra.mxu0 %v2732_v62  ;;  %2042 = vmatpush3.bf16.msra.mxu1 %v2745_v39  ;;  %3234 = vst [vmem:[#allocation23_spill] sm:$0xff] %v2816_v52  ;;  %v172_v51 = vcombine.low %v124_v63, %v125_v29  ;;  %v173_v39 = vcombine.high %v124_v63, %v125_v29  ;;  %v2835_v29 = vld [vmem:[%s3186_s1 + $0x1a8] sm:$0xff]  }
  0x35   :  { %2021 = vmatprep.subr.bf16.mxu0 %v2752_v40  ;;  %2043 = vmatprep.subr.bf16.mxu1 %v2762_v36  ;;  %3230 = vst [vmem:[#allocation19_spill] sm:$0xff] %v2793_v42  ;;  %3231 = vst [vmem:[#allocation20_spill] sm:$0xff] %v2795_v35  ;;  %v2807_v36 = vld [vmem:[%s3186_s1 + $0x1a0] sm:$0xff]   ;;  %v126_v40 = vunpack.c.l.bf16 %v2793_v42  ;;  %v127_v53 = vunpack.c.l.bf16 %v2795_v35  ;;  %v2823_v42 = vld [vmem:[%s3186_s1 + $0x1e8] sm:$0xff]  }
  0x36   :  { %3233 = vst [vmem:[#allocation22_spill] sm:$0xff] %v2807_v36  ;;  %3235 = vst [vmem:[#allocation24_spill] sm:$0xff] %v2823_v42  ;;  %v182_v35 = vrot.slane %v172_v51, %v2638_v47  ;;  %v189_v63 = vrot.slane %v173_v39, %v2638_v47  ;;  %v2851_v51 = vld [vmem:[%s3186_s1 + $0x1f0] sm:$0xff]  }
  0x37   :  { %v174_v62 = vcombine.low %v126_v40, %v127_v53  ;;  %3236 = vst [vmem:[#allocation25_spill] sm:$0xff] %v2851_v51 }
  0x38   :  { %2022 = vmatpush3.bf16.msra.mxu0 %v2768_v45  ;;  %2044 = vmatpush3.bf16.msra.mxu1 %v2773_v37  ;;  %v175_v45 = vcombine.high %v126_v40, %v127_v53  ;;  %v2828_v37 = vld [vmem:[%s3186_s1 + $0x128] sm:$0xff]   ;;  %v2844_v40 = vld [vmem:[%s3186_s1 + $0x170] sm:$0xff]  }
  0x39   :  { %2023 = vmatprep.subr.bf16.mxu0 %v2780_v38  ;;  %2045 = vmatprep.subr.bf16.mxu1 %v2791_v43  ;;  %v196_v43 = vrot.slane %v174_v62, %v2638_v47  ;;  %v2856_v53 = vld [vmem:[%s3186_s1 + $0x130] sm:$0xff]  }
  0x3a   :  { %v203_v38 = vrot.slane %v175_v45, %v2638_v47  ;;  %3237 = vst [vmem:[#allocation26_spill] sm:$0xff] %v2856_v53 }
  0x3b   :  { %v204_v62 = vcombine.low %v182_v35, %v196_v43  ;;  %v205_v39 = vcombine.high %v182_v35, %v196_v43  ;;  %v2871_v43 = vld [vmem:[%s3186_s1 + $0x178] sm:$0xff]  }
  0x3c   :  { %2024 = vmatpush3.bf16.msra.mxu0 %v2800_v44  ;;  %2046 = vmatpush3.bf16.msra.mxu1 %v2807_v36  ;;  %v206_v45 = vcombine.low %v189_v63, %v203_v38  ;;  %v207_v36 = vcombine.high %v189_v63, %v203_v38 }
  0x3d   :  { %2025 = vmatprep.subr.bf16.mxu0 %v2816_v52  ;;  %2047 = vmatprep.subr.bf16.mxu1 %v2823_v42  ;;  %v2861_v52 = vld [vmem:[%s3186_s1 + $0x1b0] sm:$0xff]   ;;  %v217_v42 = vsub.f32 %v2710_v54, %v204_v62  ;;  %v219_v44 = vsub.f32 %v2717_v55, %v205_v39  ;;  %v2879_v54 = vld [vmem:[%s3186_s1 + $0x1f8] sm:$0xff]  }
  0x3e   :  { %3238 = vst [vmem:[#allocation27_spill] sm:$0xff] %v2861_v52  ;;  %v221_v50 = vsub.f32 %v2722_v60, %v206_v45  ;;  %v223_v38 = vsub.f32 %v2727_v61, %v207_v36  ;;  %v2884_v62 = vld [vmem:[%s3186_s1 + $0x138] sm:$0xff]  }
  0x3f   :  { %v268_v55 = vcombine.low %v217_v42, %v219_v44  ;;  %v269_v60 = vcombine.high %v217_v42, %v219_v44  ;;  %v2893_v39 = vld [vmem:[%s3186_s1 + $0x1b8] sm:$0xff]  }
  0x40   :  { %2026 = vmatpush3.bf16.msra.mxu0 %v2828_v37  ;;  %2048 = vmatpush3.bf16.msra.mxu1 %v2835_v29  ;;  %v270_v35 = vcombine.low %v221_v50, %v223_v38  ;;  %v271_v63 = vcombine.high %v221_v50, %v223_v38 }
  0x41   :  { %2027 = vmatprep.subr.bf16.mxu0 %v2844_v40  ;;  %2049 = vmatprep.subr.bf16.mxu1 %v2851_v51  ;;  %v278_v61 = vrot.slane %v268_v55, %v2638_v47  ;;  %v285_v36 = vrot.slane %v269_v60, %v2638_v47 }
  0x42   :  { %v292_v50 = vrot.slane %v270_v35, %v2638_v47  ;;  %v299_v42 = vrot.slane %v271_v63, %v2638_v47  ;;  %v2322_v47 = vld [vmem:[%s3187_s2 + $0x90] sm:$0xff]  }
  0x43   :  { %v2337_v35 = vld [vmem:[%s3187_s2 + $0x30] sm:$0xff]  }
  0x44   :  { %2028 = vmatpush3.bf16.msra.mxu0 %v2856_v53  ;;  %2050 = vmatpush3.bf16.msra.mxu1 %v2861_v52  ;;  %v301_v44 = vcombine.high %v278_v61, %v292_v50  ;;  %v303_v45 = vcombine.high %v285_v36, %v299_v42  ;;  %v300_v38 = vcombine.low %v278_v61, %v292_v50  ;;  %v2338_v63 = vld [vmem:[%s3187_s2 + $0xb0] sm:$0xff]   ;;  %v2340_v61 = vld [vmem:[%s3187_s2 + $0xf8] sm:$0xff]   ;;  %v2343_v50 = vld [vmem:[%s3187_s2 + $0x140] sm:$0xff]  }
  0x45   :  { %2029 = vmatprep.subr.bf16.mxu0 %v2871_v43  ;;  %2051 = vmatprep.subr.bf16.mxu1 %v2879_v54  ;;  %v302_v55 = vcombine.low %v285_v36, %v299_v42  ;;  %v2341_v36 = vld [vmem:[%s3187_s2 + $0x38] sm:$0xff]   ;;  %v2344_v42 = vld [vmem:[%s3187_s2 + $0x1c0] sm:$0xff]  }
  0x46   :  { %v317_v60 = vpack.c.bf16 %v301_v44, %v301_v44  ;;  %v319_v52 = vpack.c.bf16 %v303_v45, %v303_v45  ;;  %v316_v53 = vpack.c.bf16 %v300_v38, %v300_v38  ;;  %v2345_v44 = vld [vmem:[%s3187_s2 + $0x100] sm:$0xff]   ;;  %v2347_v38 = vld [vmem:[%s3187_s2 + $0x148] sm:$0xff]  }
  0x47   :  { %v318_v51 = vpack.c.bf16 %v302_v55, %v302_v55  ;;  %v2346_v45 = vld [vmem:[%s3187_s2 + $0x180] sm:$0xff]   ;;  %v2348_v55 = vld [vmem:[%s3187_s2 + $0x1c8] sm:$0xff]  }
  0x48   :  { %2030 = vmatpush3.bf16.msra.mxu0 %v2884_v62  ;;  %2052 = vmatpush3.bf16.msra.mxu1 %v2893_v39 }
  0x49   :  { %2059 = vmatprep.subr.bf16.mxu0 %v2426_v0  ;;  %2081 = vmatprep.subr.bf16.mxu1 %v2431_v1  ;;  %v3239_v0 = vld [vmem:[#allocation17_spill] sm:$0xff]  ;;  %v3240_v1 = vld [vmem:[#allocation20_spill] sm:$0xff] }
  0x4a   :  { %1072 = vmatprep.mubr.bf16.mxu0 %v317_v60  ;;  %1112 = vmatprep.mubr.bf16.mxu1 %v319_v52  ;;  %v2330_v52 = vld [vmem:[%s3187_s2 + $0xa0] sm:$0xff]   ;;  %v2349_v60 = vld [vmem:[%s3187_s2 + $0x108] sm:$0xff]  }
  0x4b   :  { %1073 = vmatmul.mubr.bf16.vlgmr.msra.gmra.mrb[4].mxu0 %v316_v53  ;;  %1113 = vmatmul.mubr.bf16.vlgmr.msra.gmra.mrb[4].mxu1 %v318_v51  ;;  %v2333_v51 = vld [vmem:[%s3187_s2 + $0x28] sm:$0xff]  }
  0x4c   :  { %2060 = vmatpush3.bf16.msra.mxu0 %v2437_v2  ;;  %2082 = vmatpush3.bf16.msra.mxu1 %v2443_v3  ;;  %v3241_v2 = vld [vmem:[#allocation5_spill] sm:$0xff]  ;;  %v3242_v3 = vld [vmem:[#allocation6_spill] sm:$0xff] }
  0x4d   :  { %2061 = vmatprep.subr.bf16.mxu0 %v2449_v4  ;;  %2083 = vmatprep.subr.bf16.mxu1 %v2455_v5  ;;  %v3243_v4 = vld [vmem:[#allocation7_spill] sm:$0xff]  ;;  %v3244_v5 = vld [vmem:[#allocation8_spill] sm:$0xff]  ;;  %v2334_v53 = vld [vmem:[%s3187_s2 + $0xa8] sm:$0xff]  }
  0x4e   :  { %1152 = vmatprep.mubr.bf16.mxu0 %v2647_v57  ;;  %1192 = vmatprep.mubr.bf16.mxu1 %v2651_v59 }
  0x50   :  { %2062 = vmatpush3.bf16.msra.mxu0 %v2461_v6  ;;  %2084 = vmatpush3.bf16.msra.mxu1 %v2467_v7  ;;  %v3245_v6 = vld [vmem:[#allocation9_spill] sm:$0xff]  ;;  %v3246_v7 = vld [vmem:[#allocation10_spill] sm:$0xff] }
  0x51   :  { %2063 = vmatprep.subr.bf16.mxu0 %v2473_v8  ;;  %2085 = vmatprep.subr.bf16.mxu1 %v2479_v9  ;;  %v3247_v8 = vld [vmem:[#allocation11_spill] sm:$0xff]  ;;  %v3248_v9 = vld [vmem:[#allocation12_spill] sm:$0xff] }
  0x54   :  { %2064 = vmatpush3.bf16.msra.mxu0 %v2485_v10  ;;  %2086 = vmatpush3.bf16.msra.mxu1 %v2491_v11  ;;  %v3249_v10 = vld [vmem:[#allocation13_spill] sm:$0xff]  ;;  %v3250_v11 = vld [vmem:[#allocation14_spill] sm:$0xff] }
  0x55   :  { %2065 = vmatprep.subr.bf16.mxu0 %v2497_v12  ;;  %2087 = vmatprep.subr.bf16.mxu1 %v2503_v13  ;;  %v3251_v12 = vld [vmem:[#allocation15_spill] sm:$0xff]  ;;  %v3252_v13 = vld [vmem:[#allocation18_spill] sm:$0xff] }
  0x58   :  { %2066 = vmatpush3.bf16.msra.mxu0 %v2509_v14  ;;  %2088 = vmatpush3.bf16.msra.mxu1 %v2515_v15  ;;  %v3253_v14 = vld [vmem:[#allocation21_spill] sm:$0xff]  ;;  %v3254_v15 = vld [vmem:[#allocation22_spill] sm:$0xff] }
  0x59   :  { %2067 = vmatprep.subr.bf16.mxu0 %v2521_v16  ;;  %2089 = vmatprep.subr.bf16.mxu1 %v2527_v17  ;;  %v3255_v16 = vld [vmem:[#allocation23_spill] sm:$0xff]  ;;  %v3256_v17 = vld [vmem:[#allocation24_spill] sm:$0xff] }
  0x5c   :  { %2068 = vmatpush3.bf16.msra.mxu0 %v2533_v18  ;;  %2090 = vmatpush3.bf16.msra.mxu1 %v2539_v19  ;;  %v3257_v18 = vld [vmem:[#allocation25_spill] sm:$0xff]  ;;  %v3258_v19 = vld [vmem:[#allocation26_spill] sm:$0xff] }
  0x5d   :  { %2069 = vmatprep.subr.bf16.mxu0 %v2545_v20  ;;  %2091 = vmatprep.subr.bf16.mxu1 %v2551_v21  ;;  %v3259_v20 = vld [vmem:[#allocation27_spill] sm:$0xff]  ;;  %v2311_v21 = vld [vmem:[%s3187_s2 + $0x40] sm:$0xff]  }
  0x60   :  { %2070 = vmatpush3.bf16.msra.mxu0 %v2557_v22  ;;  %2092 = vmatpush3.bf16.msra.mxu1 %v2563_v23  ;;  %v2312_v22 = vld [vmem:[%s3187_s2 + $0xc0] sm:$0xff]  }
  0x61   :  { %2071 = vmatprep.subr.bf16.mxu0 %v2569_v24  ;;  %2093 = vmatprep.subr.bf16.mxu1 %v2575_v25  ;;  %v2313_v23 = vld [vmem:[%s3187_s2] sm:$0xff]   ;;  %v2315_v25 = vld [vmem:[%s3187_s2 + $0x48] sm:$0xff]  }
  0x62   :  { %v2314_v24 = vld [vmem:[%s3187_s2 + $0x80] sm:$0xff]  }
  0x64   :  { %2072 = vmatpush3.bf16.msra.mxu0 %v2581_v26  ;;  %2094 = vmatpush3.bf16.msra.mxu1 %v2587_v27  ;;  %v2316_v26 = vld [vmem:[%s3187_s2 + $0xc8] sm:$0xff]   ;;  %v3260_v27 = vld [vmem:[#allocation16_spill] sm:$0xff] }
  0x65   :  { %2073 = vmatprep.subr.bf16.mxu0 %v2593_v28  ;;  %2095 = vmatprep.subr.bf16.mxu1 %v2599_v30  ;;  %v3261_v28 = vld [vmem:[#allocation19_spill] sm:$0xff]  ;;  %v2317_v30 = vld [vmem:[%s3187_s2 + $0x8] sm:$0xff]  }
  0x68   :  { %2074 = vmatpush3.bf16.msra.mxu0 %v2605_v31  ;;  %2096 = vmatpush3.bf16.msra.mxu1 %v2611_v32  ;;  %v2318_v31 = vld [vmem:[%s3187_s2 + $0x88] sm:$0xff]   ;;  %v2319_v32 = vld [vmem:[%s3187_s2 + $0x50] sm:$0xff]  }
  0x69   :  { %2103 = vmatprep.subr.bf16.mxu0 %v2630_v41  ;;  %2125 = vmatprep.subr.bf16.mxu1 %v2635_v46  ;;  %v2320_v41 = vld [vmem:[%s3187_s2 + $0xd0] sm:$0xff]  }
  0x6a   :  { %v2321_v46 = vld [vmem:[%s3187_s2 + $0x10] sm:$0xff]  }
  0x6b   :  { %1153 = vmatmul.mubr.bf16.vlgmr.msra.gmra.mrb[8].mxu0 %v2645_v56  ;;  %1193 = vmatmul.mubr.bf16.vlgmr.msra.gmra.mrb[8].mxu1 %v2649_v58 }
  0x6c   :  { %2104 = vmatpush3.bf16.msra.mxu0 %v2668_v33  ;;  %2126 = vmatpush3.bf16.msra.mxu1 %v2673_v34  ;;  %v2323_v33 = vld [vmem:[%s3187_s2 + $0x58] sm:$0xff]  }
  0x6d   :  { %2105 = vmatprep.subr.bf16.mxu0 %v2678_v48  ;;  %2127 = vmatprep.subr.bf16.mxu1 %v2683_v49  ;;  %v2326_v34 = vld [vmem:[%s3187_s2 + $0x98] sm:$0xff]   ;;  %v2327_v48 = vld [vmem:[%s3187_s2 + $0x60] sm:$0xff]  }
  0x6e   :  { %1232 = vmatprep.mubr.bf16.mxu0 %v3239_v0  ;;  %1272 = vmatprep.mubr.bf16.mxu1 %v3240_v1  ;;  %v2328_v49 = vld [vmem:[%s3187_s2 + $0xe0] sm:$0xff]  }
  0x70   :  { %2106 = vmatpush3.bf16.msra.mxu0 %v3241_v2  ;;  %2128 = vmatpush3.bf16.msra.mxu1 %v3242_v3  ;;  %v2350_v2 = vld [vmem:[%s3187_s2 + $0x188] sm:$0xff]   ;;  %v2351_v3 = vld [vmem:[%s3187_s2 + $0x150] sm:$0xff]  }
  0x71   :  { %2107 = vmatprep.subr.bf16.mxu0 %v3243_v4  ;;  %2129 = vmatprep.subr.bf16.mxu1 %v3244_v5  ;;  %v2354_v4 = vld [vmem:[%s3187_s2 + $0x190] sm:$0xff]   ;;  %v2355_v5 = vld [vmem:[%s3187_s2 + $0x158] sm:$0xff]  }
  0x74   :  { %2108 = vmatpush3.bf16.msra.mxu0 %v3245_v6  ;;  %2130 = vmatpush3.bf16.msra.mxu1 %v3246_v7  ;;  %v2358_v6 = vld [vmem:[%s3187_s2 + $0x198] sm:$0xff]   ;;  %v2359_v7 = vld [vmem:[%s3187_s2 + $0x160] sm:$0xff]  }
  0x75   :  { %2109 = vmatprep.subr.bf16.mxu0 %v3247_v8  ;;  %2131 = vmatprep.subr.bf16.mxu1 %v3248_v9  ;;  %v2360_v8 = vld [vmem:[%s3187_s2 + $0x1e0] sm:$0xff]  }
  0x76   :  { %v2361_v9 = vld [vmem:[%s3187_s2 + $0x120] sm:$0xff]  }
  0x78   :  { %2110 = vmatpush3.bf16.msra.mxu0 %v3249_v10  ;;  %2132 = vmatpush3.bf16.msra.mxu1 %v3250_v11  ;;  %v2362_v10 = vld [vmem:[%s3187_s2 + $0x1a0] sm:$0xff]   ;;  %v2363_v11 = vld [vmem:[%s3187_s2 + $0x168] sm:$0xff]  }
  0x79   :  { %2111 = vmatprep.subr.bf16.mxu0 %v3251_v12  ;;  %2133 = vmatprep.subr.bf16.mxu1 %v3252_v13  ;;  %v2364_v12 = vld [vmem:[%s3187_s2 + $0x1e8] sm:$0xff]  }
  0x7a   :  { %v2365_v13 = vld [vmem:[%s3187_s2 + $0x128] sm:$0xff]  }
  0x7c   :  { %2112 = vmatpush3.bf16.msra.mxu0 %v3253_v14  ;;  %2134 = vmatpush3.bf16.msra.mxu1 %v3254_v15  ;;  %v2366_v14 = vld [vmem:[%s3187_s2 + $0x1a8] sm:$0xff]   ;;  %v2367_v15 = vld [vmem:[%s3187_s2 + $0x170] sm:$0xff]  }
  0x7d   :  { %2113 = vmatprep.subr.bf16.mxu0 %v3255_v16  ;;  %2135 = vmatprep.subr.bf16.mxu1 %v3256_v17  ;;  %v2368_v16 = vld [vmem:[%s3187_s2 + $0x1f0] sm:$0xff]  }
  0x7e   :  { %v2369_v17 = vld [vmem:[%s3187_s2 + $0x130] sm:$0xff]  }
  0x80   :  { %2114 = vmatpush3.bf16.msra.mxu0 %v2828_v37  ;;  %2136 = vmatpush3.bf16.msra.mxu1 %v2835_v29  ;;  %v2329_v37 = vld [vmem:[%s3187_s2 + $0x20] sm:$0xff]   ;;  %v2331_v29 = vld [vmem:[%s3187_s2 + $0x68] sm:$0xff]  }
  0x81   :  { %2115 = vmatprep.subr.bf16.mxu0 %v2844_v40  ;;  %2137 = vmatprep.subr.bf16.mxu1 %v3257_v18  ;;  %v2332_v40 = vld [vmem:[%s3187_s2 + $0xe8] sm:$0xff]   ;;  %v2370_v18 = vld [vmem:[%s3187_s2 + $0x1b0] sm:$0xff]  }
  0x84   :  { %2116 = vmatpush3.bf16.msra.mxu0 %v3258_v19  ;;  %2138 = vmatpush3.bf16.msra.mxu1 %v3259_v20  ;;  %v2371_v19 = vld [vmem:[%s3187_s2 + $0x178] sm:$0xff]  }
  0x85   :  { %2117 = vmatprep.subr.bf16.mxu0 %v2871_v43  ;;  %2139 = vmatprep.subr.bf16.mxu1 %v2879_v54  ;;  %v2335_v43 = vld [vmem:[%s3187_s2 + $0x70] sm:$0xff]   ;;  %v2372_v20 = vld [vmem:[%s3187_s2 + $0x1f8] sm:$0xff]  }
  0x86   :  { %v2336_v54 = vld [vmem:[%s3187_s2 + $0xf0] sm:$0xff]  }
  0x88   :  { %2118 = vmatpush3.bf16.msra.mxu0 %v2884_v62  ;;  %2140 = vmatpush3.bf16.msra.mxu1 %v2893_v39  ;;  %v2339_v62 = vld [vmem:[%s3187_s2 + $0x78] sm:$0xff]  }
  0x89   :  { %2147 = vmatprep.subr.bf16.mxu0 %v2311_v21  ;;  %2169 = vmatprep.subr.bf16.mxu1 %v2312_v22  ;;  %v2342_v39 = vld [vmem:[%s3187_s2 + $0xb8] sm:$0xff]  }
  0x8a   :  { %v2373_v21 = vld [vmem:[%s3187_s2 + $0x138] sm:$0xff]  }
  0x8b   :  { %1233 = vmatmul.mubr.bf16.vlgmr.msra.gmra.mrb[12].mxu0 %v3260_v27  ;;  %1273 = vmatmul.mubr.bf16.vlgmr.msra.gmra.mrb[12].mxu1 %v3261_v28  ;;  %v2374_v22 = vld [vmem:[%s3187_s2 + $0x1b8] sm:$0xff]  }
  0x8c   :  { %2148 = vmatpush3.bf16.msra.mxu0 %v2313_v23  ;;  %2170 = vmatpush3.bf16.msra.mxu1 %v2314_v24 }
  0x8d   :  { %2149 = vmatprep.subr.bf16.mxu0 %v2315_v25  ;;  %2171 = vmatprep.subr.bf16.mxu1 %v2316_v26 }
  0x8e   :  { %1696 = vmatprep.mubr.bf16.mxu0 %v2647_v57  ;;  %1736 = vmatprep.mubr.bf16.mxu1 %v2651_v59  ;;  %v2324_v57 = vld [vmem:[%s3187_s2 + $0xd8] sm:$0xff]  }
  0x8f   :  { %v2325_v59 = vld [vmem:[%s3187_s2 + $0x18] sm:$0xff]  }
  0x90   :  { %2150 = vmatpush3.bf16.msra.mxu0 %v2317_v30  ;;  %2172 = vmatpush3.bf16.msra.mxu1 %v2318_v31 }
  0x91   :  { %2151 = vmatprep.subr.bf16.mxu0 %v2319_v32  ;;  %2173 = vmatprep.subr.bf16.mxu1 %v2320_v41 }
  0x94   :  { %2152 = vmatpush3.bf16.msra.mxu0 %v2321_v46  ;;  %2174 = vmatpush3.bf16.msra.mxu1 %v2322_v47 }
  0x95   :  { %2153 = vmatprep.subr.bf16.mxu0 %v2323_v33  ;;  %2175 = vmatprep.subr.bf16.mxu1 %v2324_v57 }
  0x98   :  { %2154 = vmatpush3.bf16.msra.mxu0 %v2325_v59  ;;  %2176 = vmatpush3.bf16.msra.mxu1 %v2326_v34 }
  0x99   :  { %2155 = vmatprep.subr.bf16.mxu0 %v2327_v48  ;;  %2177 = vmatprep.subr.bf16.mxu1 %v2328_v49 }
  0x9c   :  { %2156 = vmatpush3.bf16.msra.mxu0 %v2329_v37  ;;  %2178 = vmatpush3.bf16.msra.mxu1 %v2330_v52 }
  0x9d   :  { %2157 = vmatprep.subr.bf16.mxu0 %v2331_v29  ;;  %2179 = vmatprep.subr.bf16.mxu1 %v2332_v40 }
  0xa0   :  { %2158 = vmatpush3.bf16.msra.mxu0 %v2333_v51  ;;  %2180 = vmatpush3.bf16.msra.mxu1 %v2334_v53 }
  0xa1   :  { %2159 = vmatprep.subr.bf16.mxu0 %v2335_v43  ;;  %2181 = vmatprep.subr.bf16.mxu1 %v2336_v54 }
  0xa4   :  { %2160 = vmatpush3.bf16.msra.mxu0 %v2337_v35  ;;  %2182 = vmatpush3.bf16.msra.mxu1 %v2338_v63 }
  0xa5   :  { %2161 = vmatprep.subr.bf16.mxu0 %v2339_v62  ;;  %2183 = vmatprep.subr.bf16.mxu1 %v2340_v61 }
  0xa8   :  { %2162 = vmatpush3.bf16.msra.mxu0 %v2341_v36  ;;  %2184 = vmatpush3.bf16.msra.mxu1 %v2342_v39 }
  0xa9   :  { %2191 = vmatprep.subr.bf16.mxu0 %v2343_v50  ;;  %2213 = vmatprep.subr.bf16.mxu1 %v2344_v42 }
  0xab   :  { %1697 = vmatmul.mubr.bf16.vlgmr.msra.gmra.mrb[16].mxu0 %v2645_v56  ;;  %1737 = vmatmul.mubr.bf16.vlgmr.msra.gmra.mrb[16].mxu1 %v2649_v58  ;;  %v2352_v56 = vld [vmem:[%s3187_s2 + $0x1d0] sm:$0xff]  }
  0xac   :  { %2192 = vmatpush3.bf16.msra.mxu0 %v2345_v44  ;;  %2214 = vmatpush3.bf16.msra.mxu1 %v2346_v45  ;;  %v2353_v58 = vld [vmem:[%s3187_s2 + $0x110] sm:$0xff]  }
  0xad   :  { %2193 = vmatprep.subr.bf16.mxu0 %v2347_v38  ;;  %2215 = vmatprep.subr.bf16.mxu1 %v2348_v55 }
  0xae   :  { %1776 = vmatprep.mubr.bf16.mxu0 %v3239_v0  ;;  %1816 = vmatprep.mubr.bf16.mxu1 %v3240_v1  ;;  %v2356_v0 = vld [vmem:[%s3187_s2 + $0x1d8] sm:$0xff]  }
  0xaf   :  { %v2357_v1 = vld [vmem:[%s3187_s2 + $0x118] sm:$0xff]  }
  0xb0   :  { %2194 = vmatpush3.bf16.msra.mxu0 %v2349_v60  ;;  %2216 = vmatpush3.bf16.msra.mxu1 %v2350_v2 }
  0xb1   :  { %2195 = vmatprep.subr.bf16.mxu0 %v2351_v3  ;;  %2217 = vmatprep.subr.bf16.mxu1 %v2352_v56 }
  0xb4   :  { %2196 = vmatpush3.bf16.msra.mxu0 %v2353_v58  ;;  %2218 = vmatpush3.bf16.msra.mxu1 %v2354_v4 }
  0xb5   :  { %2197 = vmatprep.subr.bf16.mxu0 %v2355_v5  ;;  %2219 = vmatprep.subr.bf16.mxu1 %v2356_v0 }
  0xb8   :  { %2198 = vmatpush3.bf16.msra.mxu0 %v2357_v1  ;;  %2220 = vmatpush3.bf16.msra.mxu1 %v2358_v6 }
  0xb9   :  { %2199 = vmatprep.subr.bf16.mxu0 %v2359_v7  ;;  %2221 = vmatprep.subr.bf16.mxu1 %v2360_v8 }
  0xbc   :  { %2200 = vmatpush3.bf16.msra.mxu0 %v2361_v9  ;;  %2222 = vmatpush3.bf16.msra.mxu1 %v2362_v10 }
  0xbd   :  { %2201 = vmatprep.subr.bf16.mxu0 %v2363_v11  ;;  %2223 = vmatprep.subr.bf16.mxu1 %v2364_v12 }
  0xc0   :  { %2202 = vmatpush3.bf16.msra.mxu0 %v2365_v13  ;;  %2224 = vmatpush3.bf16.msra.mxu1 %v2366_v14 }
  0xc1   :  { %2203 = vmatprep.subr.bf16.mxu0 %v2367_v15  ;;  %2225 = vmatprep.subr.bf16.mxu1 %v2368_v16 }
  0xc4   :  { %2204 = vmatpush3.bf16.msra.mxu0 %v2369_v17  ;;  %2226 = vmatpush3.bf16.msra.mxu1 %v2370_v18 }
  0xc5   :  { %2205 = vmatprep.subr.bf16.mxu0 %v2371_v19  ;;  %2227 = vmatprep.subr.bf16.mxu1 %v2372_v20 }
  0xc8   :  { %2206 = vmatpush3.bf16.msra.mxu0 %v2373_v21  ;;  %2228 = vmatpush3.bf16.msra.mxu1 %v2374_v22 }
  0xcb   :  { %1777 = vmatmul.mubr.bf16.vlgmr.msra.gmra.mrb[20].mxu0 %v3260_v27  ;;  %1817 = vmatmul.mubr.bf16.vlgmr.msra.gmra.mrb[20].mxu1 %v3261_v28 }
  0xfe   :  { %v1987_v23 = vpop.f32.mrb[0].mxu0  ;;  %v2009_v24 = vpop.f32.mrb[0].mxu1 }
  0xff   :  { %v1988_v25 = vpop.f32.mrb[1].mxu0  ;;  %v2010_v26 = vpop.f32.mrb[1].mxu1 }
 0x100   :  { %v1989_v30 = vadd.f32 %v1988_v25, %v1987_v23  ;;  %v2011_v31 = vadd.f32 %v2010_v26, %v2009_v24  ;;  %v1990_v32 = vpop.f32.mrb[2].mxu0  ;;  %v2012_v41 = vpop.f32.mrb[2].mxu1 }
 0x101   :  { %v1991_v46 = vpop.f32.mrb[3].mxu0  ;;  %v2013_v47 = vpop.f32.mrb[3].mxu1 }
 0x102   :  { %v1035_v33 = vadd.f32 %v2011_v31, %v1989_v30 }
 0x11e   :  { %v2031_v57 = vpop.f32.mrb[4].mxu0  ;;  %v2053_v59 = vpop.f32.mrb[4].mxu1 }
 0x11f   :  { %v2032_v34 = vpop.f32.mrb[5].mxu0  ;;  %v2054_v48 = vpop.f32.mrb[5].mxu1 }
 0x120   :  { %v2033_v49 = vadd.f32 %v2032_v34, %v2031_v57  ;;  %v2055_v37 = vadd.f32 %v2054_v48, %v2053_v59  ;;  %v2034_v27 = vpop.f32.mrb[6].mxu0  ;;  %v2056_v52 = vpop.f32.mrb[6].mxu1 }
 0x121   :  { %v2035_v28 = vpop.f32.mrb[7].mxu0  ;;  %v2057_v29 = vpop.f32.mrb[7].mxu1 }
 0x122   :  { %v1075_v40 = vadd.f32 %v2033_v49, %v1035_v33 }
 0x124   :  { %v1115_v51 = vadd.f32 %v2055_v37, %v1075_v40 }
 0x13e   :  { %v2075_v53 = vpop.f32.mrb[8].mxu0  ;;  %v2097_v43 = vpop.f32.mrb[8].mxu1 }
 0x13f   :  { %v2076_v54 = vpop.f32.mrb[9].mxu0  ;;  %v2098_v35 = vpop.f32.mrb[9].mxu1 }
 0x140   :  { %v2077_v63 = vadd.f32 %v2076_v54, %v2075_v53  ;;  %v2099_v62 = vadd.f32 %v2098_v35, %v2097_v43  ;;  %v2078_v61 = vpop.f32.mrb[10].mxu0  ;;  %v2100_v36 = vpop.f32.mrb[10].mxu1 }
 0x141   :  { %v2079_v39 = vpop.f32.mrb[11].mxu0  ;;  %v2101_v50 = vpop.f32.mrb[11].mxu1 }
 0x142   :  { %v1155_v42 = vadd.f32 %v2077_v63, %v1115_v51 }
 0x144   :  { %v1195_v44 = vadd.f32 %v2099_v62, %v1155_v42 }
 0x15e   :  { %v2119_v45 = vpop.f32.mrb[12].mxu0  ;;  %v2141_v38 = vpop.f32.mrb[12].mxu1 }
 0x15f   :  { %v2120_v55 = vpop.f32.mrb[13].mxu0  ;;  %v2142_v60 = vpop.f32.mrb[13].mxu1 }
 0x160   :  { %v2121_v2 = vadd.f32 %v2120_v55, %v2119_v45  ;;  %v2143_v3 = vadd.f32 %v2142_v60, %v2141_v38  ;;  %v2122_v56 = vpop.f32.mrb[14].mxu0  ;;  %v2144_v58 = vpop.f32.mrb[14].mxu1 }
 0x161   :  { %v2123_v4 = vpop.f32.mrb[15].mxu0  ;;  %v2145_v5 = vpop.f32.mrb[15].mxu1 }
 0x162   :  { %v1235_v0 = vadd.f32 %v2121_v2, %v1195_v44 }
 0x164   :  { %v1275_v1 = vadd.f32 %v2143_v3, %v1235_v0 }
 0x17e   :  { %v2163_v6 = vpop.f32.mrb[16].mxu0  ;;  %v2185_v7 = vpop.f32.mrb[16].mxu1 }
 0x17f   :  { %v2164_v8 = vpop.f32.mrb[17].mxu0  ;;  %v2186_v9 = vpop.f32.mrb[17].mxu1 }
 0x180   :  { %v2165_v10 = vadd.f32 %v2164_v8, %v2163_v6  ;;  %v2187_v11 = vadd.f32 %v2186_v9, %v2185_v7  ;;  %v2166_v12 = vpop.f32.mrb[18].mxu0  ;;  %v2188_v13 = vpop.f32.mrb[18].mxu1 }
 0x181   :  { %v2167_v14 = vpop.f32.mrb[19].mxu0  ;;  %v2189_v15 = vpop.f32.mrb[19].mxu1 }
 0x182   :  { %v1739_v16 = vadd.f32 %v2187_v11, %v2165_v10 }
 0x19e   :  { %v2207_v17 = vpop.f32.mrb[20].mxu0  ;;  %v2229_v18 = vpop.f32.mrb[20].mxu1 }
 0x19f   :  { %v2208_v19 = vpop.f32.mrb[21].mxu0  ;;  %v2230_v20 = vpop.f32.mrb[21].mxu1 }
 0x1a0   :  { %v2209_v21 = vadd.f32 %v2208_v19, %v2207_v17  ;;  %v2231_v22 = vadd.f32 %v2230_v20, %v2229_v18  ;;  %v2210_v23 = vpop.f32.mrb[22].mxu0  ;;  %v2232_v24 = vpop.f32.mrb[22].mxu1 }
 0x1a1   :  { %v2211_v25 = vpop.f32.mrb[23].mxu0  ;;  %v2233_v26 = vpop.f32.mrb[23].mxu1 }
 0x1a2   :  { %v1779_v30 = vadd.f32 %v2209_v21, %v1739_v16 }
 0x1a4   :  { %v1819_v31 = vadd.f32 %v2231_v22, %v1779_v30 }
 0x1a6   :  { %v1824_v32 = vadd.f32 %v1819_v31, %v1275_v1 }
 0x1a8   :  { %1826 = vst.msk [vmem:[#allocation2] sm:$0xff] %vm1825_vm0, %v1824_v32 }
 0x1a9   :  { %1831 = vsyncadd [#allocation3], 96  ;;  %s2400_s2 = smov [#allocation2]  }
 0x1aa   :  { %s1832_s30 = sshll.u32 %s2400_s2, 4  ;;  %s1833_s30 = int_to_ptr.vmem [resolvable:$true] %s1832_s30 }
 0x1ab   :  { %s2375_s4 = scalar_lea.vmem %s1833_s30, 32  ;;  %s2379_s5 = scalar_lea.vmem %s1833_s30, 128 }
 0x1ac   :  { %p2376_p0 = scmp.ne.s32.totalorder %s1833_s30, %s2375_s4  ;;  %p2380_p1 = scmp.lt.s32.totalorder %s1833_s30, %s1833_s30 }
 0x1ad   :  { %p2381_p2 = scmp.lt.s32.totalorder %s2379_s5, %s2375_s4 }
 0x1af   :  { %p2382_p3 = por %p2381_p2, %p2380_p1 }
 0x1b1   :  { %p2383_p4 = pnand %p2382_p3, %p2376_p0 }
 0x1b3   :  { %2386 = shalt.err (!%p2383_p4)
}
 0x1b4   :  { %s2387_s7 = scalar_lea.hbm %s3188_s3, 32 }
 0x1b5   :  { %p2388_p5 = scmp.ne.s32.totalorder %s3188_s3, %s2387_s7  ;;  %p2391_p6 = scmp.lt.u32.totalorder %s2387_s7, %s3188_s3 }
 0x1b7   :  { %p2393_p7 = pnand %p2391_p6, %p2388_p5 }
 0x1b9   :  { %2396 = shalt.err (!%p2393_p7)
}
 0x1ba   :  { %s2401_s12 = smov 32   ;;  %s2402_s13 = smov 2  }
 0x1bb   :  { %1838 = dma.vmem_to_hbm [thread:$0]  %s1833_s30, 32, %s3188_s3, [#allocation3], %s2401_s12, %s2401_s12, %s2402_s13  }
 0x1bc   :  { %2397 = dma.done.wait [#allocation3], 128  }
 0x1bd   :  { %2398 = vsyncadd [#allocation3], 4294967168 }
 0x1be   :  { %1842 = vsyncpa [#allocation3], 1 }

</bundles_post_ra>
